<compile_context>
chip_gen: v7x
topology: tpu7x:2x2x1
jax: 0.10.0
libtpu: 0.0.40
codegen_flags: <defaults>
</compile_context>

<pallas_src>
import jax
import jax.numpy as jnp
from jax.experimental import pallas as pl
from jax.experimental.pallas import tpu as pltpu

_LANE = 128


def _round_up(n, m):
    return ((n + m - 1) // m) * m


def _pick_tb(batch):
    """Batch tile: full array for tiny B; otherwise a large multiple of 16,
    halved until the grid has >= 2 steps (keeps both v7x TCs busy)."""
    if batch <= 16:
        return batch          # block dim == full array dim -> always legal
    tb = 1024                 # ~0.3 MB of double-buffered x/out: far below VMEM
    while tb > 16 and batch < 2 * tb:
        tb //= 2
    return tb


def fused_mlp_kernel(alpha_ref,
                     x_ref,
                     w1_ref, b1_ref,
                     w2_ref, b2_ref,
                     w3_ref, b3_ref,
                     o_ref):
    """One batch tile: (Linear -> Dropout(p=0) -> PReLU) x2 -> Linear, all in VMEM."""
    a = alpha_ref[0, 0]  # shared PReLU slope (num_parameters=1, init=1.0)

    # Layer 1: Linear + (Dropout no-op) + PReLU  (bf16 MXU, f32 accumulate)
    h = jnp.dot(x_ref[...], w1_ref[...],
                preferred_element_type=jnp.float32) + b1_ref[...]
    h = jnp.where(h >= 0, h, a * h)

    # Layer 2: Linear + (Dropout no-op) + PReLU
    h = jnp.dot(h.astype(jnp.bfloat16), w2_ref[...],
                preferred_element_type=jnp.float32) + b2_ref[...]
    h = jnp.where(h >= 0, h, a * h)

    # Output layer: Linear (no output activation)
    o = jnp.dot(h.astype(jnp.bfloat16), w3_ref[...],
                preferred_element_type=jnp.float32) + b3_ref[...]
    o_ref[...] = o.astype(o_ref.dtype)


def prepare_params(params):
    """One-time padding + bf16 cast of weights/biases (hoisted off the fwd path).

    Hidden dims are lane-padded to multiples of 128 (lane-dense VMEM-resident
    weights + intermediate activations); the input K dim and the output N dim
    are left at their true sizes (full-array dims) so x / out DMA no padded
    bytes. Zero padding is exact.
    """
    (w1, b1), (w2, b2), (w3, b3) = params
    d_h1, d_h2 = w1.shape[1], w2.shape[1]
    dp_h1 = _round_up(d_h1, _LANE)
    dp_h2 = _round_up(d_h2, _LANE)

    w1p = jnp.pad(w1, ((0, 0), (0, dp_h1 - d_h1))).astype(jnp.bfloat16)
    b1p = jnp.pad(b1, ((0, 0), (0, dp_h1 - d_h1))).astype(jnp.float32)
    w2p = jnp.pad(w2, ((0, dp_h1 - d_h1), (0, dp_h2 - d_h2))).astype(jnp.bfloat16)
    b2p = jnp.pad(b2, ((0, 0), (0, dp_h2 - d_h2))).astype(jnp.float32)
    w3p = jnp.pad(w3, ((0, dp_h2 - d_h2), (0, 0))).astype(jnp.bfloat16)
    b3p = b3.astype(jnp.float32)
    return (w1p, b1p, w2p, b2p, w3p, b3p)


def mlp_forward(state, prepared, alpha):
    """state: (B, d_in) f32. prepared: output of prepare_params. alpha: scalar."""
    w1p, b1p, w2p, b2p, w3p, b3p = prepared
    B, d_in = state.shape
    d_out = w3p.shape[1]

    tb = _pick_tb(B)
    grid = (pl.cdiv(B, tb),)            # partial last block handled by the pipeline

    x_bf = state.astype(jnp.bfloat16)   # halve streamed bytes; cast happens anyway
    alpha_arr = jnp.asarray(alpha, jnp.float32).reshape(1, 1)

    const = lambda i: (0, 0)            # weights/biases: same block every step -> resident

    out = pl.pallas_call(
        fused_mlp_kernel,
        out_shape=jax.ShapeDtypeStruct((B, d_out), jnp.float32),
        grid=grid,
        in_specs=[
            pl.BlockSpec((1, 1), const, memory_space=pltpu.MemorySpace.SMEM),  # alpha
            pl.BlockSpec((tb, d_in), lambda i: (i, 0)),                        # x tile (bf16)
            pl.BlockSpec(w1p.shape, const), pl.BlockSpec(b1p.shape, const),
            pl.BlockSpec(w2p.shape, const), pl.BlockSpec(b2p.shape, const),
            pl.BlockSpec(w3p.shape, const), pl.BlockSpec(b3p.shape, const),
        ],
        out_specs=pl.BlockSpec((tb, d_out), lambda i: (i, 0)),
        compiler_params=pltpu.CompilerParams(
            dimension_semantics=("parallel",),
            vmem_limit_bytes=32 * 1024 * 1024,   # explicit budget, safe on v5e/v6e/v7x
        ),
    )(alpha_arr, x_bf, w1p, b1p, w2p, b2p, w3p, b3p)

    return out


def init_params(key, sizes):
    """Deterministic param init (uniform, like PyTorch's default Linear init)."""
    params = []
    for j in range(len(sizes) - 1):
        fan_in, fan_out = sizes[j], sizes[j + 1]
        key, kw, kb = jax.random.split(key, 3)
        bound = 1.0 / (fan_in ** 0.5)
        w = jax.random.uniform(kw, (fan_in, fan_out), jnp.float32, -bound, bound)
        b = jax.random.uniform(kb, (1, fan_out), jnp.float32, -bound, bound)
        params.append((w, b))
    return params


def reference_forward(state, params, alpha):
    """Plain-JAX f32 reference matching PyTorch semantics."""
    h = state
    n = len(params)
    for i, (w, b) in enumerate(params):
        h = h @ w + b
        if i < n - 1:  # Dropout(p=0) is a no-op; PReLU with shared slope
            h = jnp.where(h >= 0, h, alpha * h)
    return h


if __name__ == "__main__":
    # Model(initial=[32], other=[64, 64], action_num=[8]) -> sizes = [32, 64, 64, 8]
    initial, other, action_num = [32], [64, 64], [8]
    sizes = initial + other + action_num
    batch = 4

    key = jax.random.PRNGKey(0)
    key, kx = jax.random.split(key)
    state = jax.random.normal(kx, (batch, sizes[0]), jnp.float32)
    params = init_params(key, sizes)
    prepared = prepare_params(params)   # one-time pad + bf16 cast (off the fwd path)

    fwd = jax.jit(mlp_forward)

    # Module default: nn.PReLU(init=1) -> alpha = 1.0
    out = jax.block_until_ready(fwd(state, prepared, 1.0))
    ref = reference_forward(state, params, 1.0)
    assert out.shape == (batch, sizes[-1])
    assert jnp.allclose(out, ref, atol=3e-2, rtol=3e-2), "mismatch vs reference (alpha=1)"

    # Exercise the negative-slope branch of PReLU as well (learnable param).
    out2 = jax.block_until_ready(fwd(state, prepared, 0.25))
    ref2 = reference_forward(state, params, 0.25)
    assert jnp.allclose(out2, ref2, atol=3e-2, rtol=3e-2), "mismatch vs reference (alpha=0.25)"

    # Multi-tile path: grid > 1 with a partial last block (cdiv boundary handling).
    key, kx2 = jax.random.split(key)
    state_big = jax.random.normal(kx2, (100, sizes[0]), jnp.float32)
    out3 = jax.block_until_ready(fwd(state_big, prepared, 0.25))
    ref3 = reference_forward(state_big, params, 0.25)
    assert out3.shape == (100, sizes[-1])
    assert jnp.allclose(out3, ref3, atol=3e-2, rtol=3e-2), "mismatch vs reference (multi-tile)"

    print("KERNEL_OK")
</pallas_src>

<mosaic_0001>
module attributes {stable_mosaic.version = 11 : i64} {
  func.func @fused_mlp_kernel(%arg0: i32, %arg1: memref<1x1xf32, #tpu.memory_space<smem>>, %arg2: memref<4x32xbf16, #tpu.memory_space<vmem>>, %arg3: memref<32x128xbf16, #tpu.memory_space<vmem>>, %arg4: memref<1x128xf32, #tpu.memory_space<vmem>>, %arg5: memref<128x128xbf16, #tpu.memory_space<vmem>>, %arg6: memref<1x128xf32, #tpu.memory_space<vmem>>, %arg7: memref<128x8xbf16, #tpu.memory_space<vmem>>, %arg8: memref<1x8xf32, #tpu.memory_space<vmem>>, %arg9: memref<4x8xf32, #tpu.memory_space<vmem>>) attributes {dimension_semantics = [#tpu.dimension_semantics<parallel>], iteration_bounds = array<i64: 1>, scalar_prefetch = 0 : i64, scratch_operands = 0 : i64, tpu.core_type = #tpu.core_type<tc>, window_params = [{transform_indices = @transform_0, window_bounds = array<i64: 1, 1>}, {transform_indices = @transform_1, window_bounds = array<i64: 4, 32>}, {pipeline_mode = #tpu.pipeline_mode<synchronous>, transform_indices = @transform_2, window_bounds = array<i64: 32, 128>}, {pipeline_mode = #tpu.pipeline_mode<synchronous>, transform_indices = @transform_3, window_bounds = array<i64: 1, 128>}, {pipeline_mode = #tpu.pipeline_mode<synchronous>, transform_indices = @transform_4, window_bounds = array<i64: 128, 128>}, {pipeline_mode = #tpu.pipeline_mode<synchronous>, transform_indices = @transform_5, window_bounds = array<i64: 1, 128>}, {pipeline_mode = #tpu.pipeline_mode<synchronous>, transform_indices = @transform_6, window_bounds = array<i64: 128, 8>}, {pipeline_mode = #tpu.pipeline_mode<synchronous>, transform_indices = @transform_7, window_bounds = array<i64: 1, 8>}, {transform_indices = @transform_8, window_bounds = array<i64: 4, 8>}]} {
    %c0 = arith.constant 0 : index
    %c0_0 = arith.constant 0 : index
    %0 = memref.load %arg1[%c0, %c0_0] : memref<1x1xf32, #tpu.memory_space<smem>>
    %c0_1 = arith.constant 0 : index
    %c0_2 = arith.constant 0 : index
    %1 = vector.load %arg2[%c0_1, %c0_2] : memref<4x32xbf16, #tpu.memory_space<vmem>>, vector<4x32xbf16>
    %c0_3 = arith.constant 0 : index
    %c0_4 = arith.constant 0 : index
    %2 = vector.load %arg3[%c0_3, %c0_4] : memref<32x128xbf16, #tpu.memory_space<vmem>>, vector<32x128xbf16>
    %cst = arith.constant dense<0.000000e+00> : vector<4x128xf32>
    %3 = tpu.matmul %1, %2, %cst {dimension_numbers = #tpu.dot_dimension_numbers<[1], [0], [0], [1], [0, 0, 1, 1], [], []>} : vector<4x32xbf16>, vector<32x128xbf16>, vector<4x128xf32> -> vector<4x128xf32>
    %c0_5 = arith.constant 0 : index
    %c0_6 = arith.constant 0 : index
    %4 = vector.load %arg4[%c0_5, %c0_6] : memref<1x128xf32, #tpu.memory_space<vmem>>, vector<1x128xf32>
    %5 = vector.broadcast %4 : vector<1x128xf32> to vector<4x128xf32>
    %6 = arith.addf %3, %5 : vector<4x128xf32>
    %cst_7 = arith.constant 0.000000e+00 : f32
    %7 = vector.broadcast %cst_7 : f32 to vector<4x128xf32>
    %8 = arith.cmpf oge, %6, %7 : vector<4x128xf32>
    %9 = vector.broadcast %0 : f32 to vector<4x128xf32>
    %10 = arith.mulf %9, %6 : vector<4x128xf32>
    %11 = arith.select %8, %6, %10 : vector<4x128xi1>, vector<4x128xf32>
    %12 = arith.truncf %11 : vector<4x128xf32> to vector<4x128xbf16>
    %c0_8 = arith.constant 0 : index
    %c0_9 = arith.constant 0 : index
    %13 = vector.load %arg5[%c0_8, %c0_9] : memref<128x128xbf16, #tpu.memory_space<vmem>>, vector<128x128xbf16>
    %cst_10 = arith.constant dense<0.000000e+00> : vector<4x128xf32>
    %14 = tpu.matmul %12, %13, %cst_10 {dimension_numbers = #tpu.dot_dimension_numbers<[1], [0], [0], [1], [0, 0, 1, 1], [], []>} : vector<4x128xbf16>, vector<128x128xbf16>, vector<4x128xf32> -> vector<4x128xf32>
    %c0_11 = arith.constant 0 : index
    %c0_12 = arith.constant 0 : index
    %15 = vector.load %arg6[%c0_11, %c0_12] : memref<1x128xf32, #tpu.memory_space<vmem>>, vector<1x128xf32>
    %16 = vector.broadcast %15 : vector<1x128xf32> to vector<4x128xf32>
    %17 = arith.addf %14, %16 : vector<4x128xf32>
    %cst_13 = arith.constant 0.000000e+00 : f32
    %18 = vector.broadcast %cst_13 : f32 to vector<4x128xf32>
    %19 = arith.cmpf oge, %17, %18 : vector<4x128xf32>
    %20 = vector.broadcast %0 : f32 to vector<4x128xf32>
    %21 = arith.mulf %20, %17 : vector<4x128xf32>
    %22 = arith.select %19, %17, %21 : vector<4x128xi1>, vector<4x128xf32>
    %23 = arith.truncf %22 : vector<4x128xf32> to vector<4x128xbf16>
    %c0_14 = arith.constant 0 : index
    %c0_15 = arith.constant 0 : index
    %24 = vector.load %arg7[%c0_14, %c0_15] : memref<128x8xbf16, #tpu.memory_space<vmem>>, vector<128x8xbf16>
    %cst_16 = arith.constant dense<0.000000e+00> : vector<4x8xf32>
    %25 = tpu.matmul %23, %24, %cst_16 {dimension_numbers = #tpu.dot_dimension_numbers<[1], [0], [0], [1], [0, 0, 1, 1], [], []>} : vector<4x128xbf16>, vector<128x8xbf16>, vector<4x8xf32> -> vector<4x8xf32>
    %c0_17 = arith.constant 0 : index
    %c0_18 = arith.constant 0 : index
    %26 = vector.load %arg8[%c0_17, %c0_18] : memref<1x8xf32, #tpu.memory_space<vmem>>, vector<1x8xf32>
    %27 = vector.broadcast %26 : vector<1x8xf32> to vector<4x8xf32>
    %28 = arith.addf %25, %27 : vector<4x8xf32>
    %c0_19 = arith.constant 0 : index
    %c0_20 = arith.constant 0 : index
    %29 = vector.load %arg9[%c0_19, %c0_20] : memref<4x8xf32, #tpu.memory_space<vmem>>, vector<4x8xf32>
    tpu.vector_store %arg9[%c0_19, %c0_20], %28 {strides = array<i32>} : memref<4x8xf32, #tpu.memory_space<vmem>>, vector<4x8xf32>,
    return
  }
  func.func @transform_0(%arg0: i32) -> (i32, i32) {
    %c0_i32 = arith.constant 0 : i32
    %c0_i32_0 = arith.constant 0 : i32
    %c0_i32_1 = arith.constant 0 : i32
    return %c0_i32, %c0_i32_0 : i32, i32
  }
  func.func @transform_1(%arg0: i32) -> (i32, i32) {
    %c0_i32 = arith.constant 0 : i32
    %c0_i32_0 = arith.constant 0 : i32
    return %arg0, %c0_i32 : i32, i32
  }
  func.func @transform_2(%arg0: i32) -> (i32, i32) {
    %c0_i32 = arith.constant 0 : i32
    %c0_i32_0 = arith.constant 0 : i32
    %c0_i32_1 = arith.constant 0 : i32
    return %c0_i32, %c0_i32_0 : i32, i32
  }
  func.func @transform_3(%arg0: i32) -> (i32, i32) {
    %c0_i32 = arith.constant 0 : i32
    %c0_i32_0 = arith.constant 0 : i32
    %c0_i32_1 = arith.constant 0 : i32
    return %c0_i32, %c0_i32_0 : i32, i32
  }
  func.func @transform_4(%arg0: i32) -> (i32, i32) {
    %c0_i32 = arith.constant 0 : i32
    %c0_i32_0 = arith.constant 0 : i32
    %c0_i32_1 = arith.constant 0 : i32
    return %c0_i32, %c0_i32_0 : i32, i32
  }
  func.func @transform_5(%arg0: i32) -> (i32, i32) {
    %c0_i32 = arith.constant 0 : i32
    %c0_i32_0 = arith.constant 0 : i32
    %c0_i32_1 = arith.constant 0 : i32
    return %c0_i32, %c0_i32_0 : i32, i32
  }
  func.func @transform_6(%arg0: i32) -> (i32, i32) {
    %c0_i32 = arith.constant 0 : i32
    %c0_i32_0 = arith.constant 0 : i32
    %c0_i32_1 = arith.constant 0 : i32
    return %c0_i32, %c0_i32_0 : i32, i32
  }
  func.func @transform_7(%arg0: i32) -> (i32, i32) {
    %c0_i32 = arith.constant 0 : i32
    %c0_i32_0 = arith.constant 0 : i32
    %c0_i32_1 = arith.constant 0 : i32
    return %c0_i32, %c0_i32_0 : i32, i32
  }
  func.func @transform_8(%arg0: i32) -> (i32, i32) {
    %c0_i32 = arith.constant 0 : i32
    %c0_i32_0 = arith.constant 0 : i32
    return %arg0, %c0_i32 : i32, i32
  }
}

</mosaic_0001>

<bundles_post_ra>
// kernel: mlp_forward.1
= control target key start
LH: loop header
LB: loop body
LE: loop exit
PB: predicated region body
PF: predicated region fallthrough
CT: control target
= control target key end

     0   :  { %v484_v1 = vmov 0.0   ;;  %vm485_vm0 = vmmov 0   ;;  %vm57_vm1 = vcmask 261120   ;;  %s637_s0 = inlined_call_operand.<no memory space> [shape: f32[1,1], index: 0, kind: input, shape index: {}]   ;;  %s638_s1 = inlined_call_operand.vmem [shape: bf16[4,32], index: 1, kind: input, shape index: {}]   ;;  %s639_s2 = inlined_call_operand.vmem [shape: bf16[32,128], index: 2, kind: input, shape index: {}]   ;;  %s640_s3 = inlined_call_operand.vmem [shape: f32[1,128], index: 3, kind: input, shape index: {}]   ;;  %s641_s4 = inlined_call_operand.vmem [shape: bf16[128,128], index: 4, kind: input, shape index: {}]   ;;  %s642_s5 = inlined_call_operand.vmem [shape: f32[1,128], index: 5, kind: input, shape index: {}]   ;;  %s643_s6 = inlined_call_operand.vmem [shape: bf16[128,8], index: 6, kind: input, shape index: {}]   ;;  %s644_s7 = inlined_call_operand.vmem [shape: f32[1,8], index: 7, kind: input, shape index: {}]   ;;  %s645_s8 = inlined_call_operand.hbm [shape: f32[4,8], index: 8, kind: output, shape index: {}]  }
   0x1   :  { %v442_v0 = vld [vmem:[%s639_s2] sm:$0xff]   ;;  %391 = vmatprep.subr.bf16.mxu0 %v484_v1  ;;  %399 = vmatprep.subr.bf16.mxu1 %v484_v1  ;;  %v443_v2 = vld [vmem:[%s639_s2 + $0x8] sm:$0xff]   ;;  %v446_v6 = vld [vmem:[%s641_s4 + $0x10] sm:$0xff]  }
   0x2   :  { %392 = vmatpush3.bf16.msra.mxu0 %v442_v0  ;;  %395 = vmatprep.mubr.msk.bf16.mxu0 %vm485_vm0, %v484_v1  ;;  %v444_v3 = vld [vmem:[%s641_s4] sm:$0xff]   ;;  %v445_v4 = vld [vmem:[%s641_s4 + $0x8] sm:$0xff]   ;;  %v447_v7 = vld [vmem:[%s641_s4 + $0x18] sm:$0xff]  }
   0x3   :  { %393 = vmatprep.subr.bf16.mxu0 %v484_v1  ;;  %415 = vmatprep.mubr.msk.bf16.mxu1 %vm485_vm0, %v484_v1  ;;  %v33_v5 = vld [vmem:[%s638_s1] sm:$0x3] }
   0x4   :  { %400 = vmatpush3.bf16.msra.mxu1 %v444_v3 }
   0x5   :  { %401 = vmatprep.subr.bf16.mxu1 %v484_v1 }
   0x6   :  { %394 = vmatpush3.bf16.msra.mxu0 %v443_v2 }
   0x7   :  { %419 = vmatprep.subr.bf16.mxu0 %v484_v1 }
   0x8   :  { %402 = vmatpush3.bf16.msra.mxu1 %v445_v4 }
   0x9   :  { %396 = vmatmul.mubr.msk.bf16.vlgmr.msra.gmra.mrb[0].mxu0 %vm57_vm1, %v33_v5  ;;  %403 = vmatprep.subr.bf16.mxu1 %v484_v1 }
   0xa   :  { %435 = vmatprep.mubr.msk.bf16.mxu0 %vm485_vm0, %v484_v1 }
   0xc   :  { %404 = vmatpush3.bf16.msra.mxu1 %v446_v6 }
   0xd   :  { %405 = vmatprep.subr.bf16.mxu1 %v484_v1 }
   0xe   :  { %14 = vsyncpa [#allocation4], 0  ;;  %v448_v8 = vld [vmem:[%s641_s4 + $0x20] sm:$0xff]   ;;  %v449_v9 = vld [vmem:[%s641_s4 + $0x28] sm:$0xff]   ;;  %v102_v20 = vstv %s637_s0  ;;  %vm332_vm4 = vcmask 60416  }
   0xf   :  { %v450_v10 = vld [vmem:[%s641_s4 + $0x30] sm:$0xff]   ;;  %v451_v11 = vld [vmem:[%s641_s4 + $0x38] sm:$0xff]   ;;  %v452_v12 = vld [vmem:[%s643_s6] sm:$0xff]  }
  0x10   :  { %406 = vmatpush3.bf16.msra.mxu1 %v447_v7  ;;  %420 = vmatpush3.bf16.msra.mxu0 %v452_v12  ;;  %v453_v13 = vld [vmem:[%s643_s6 + $0x8] sm:$0xff]   ;;  %v454_v14 = vld [vmem:[%s643_s6 + $0x10] sm:$0xff]   ;;  %v455_v15 = vld [vmem:[%s643_s6 + $0x18] sm:$0xff]  }
  0x11   :  { %407 = vmatprep.subr.bf16.mxu1 %v484_v1  ;;  %421 = vmatprep.subr.bf16.mxu0 %v484_v1  ;;  %v456_v16 = vld [vmem:[%s643_s6 + $0x20] sm:$0xff]   ;;  %v457_v17 = vld [vmem:[%s643_s6 + $0x28] sm:$0xff]   ;;  %v458_v28 = vld [vmem:[%s643_s6 + $0x30] sm:$0xff]  }
  0x12   :  { %v348_v18 = vld [vmem:[%s640_s3] ss:$0 sm:$0xff]  ;;  %v459_v29 = vld [vmem:[%s643_s6 + $0x38] sm:$0xff]   ;;  %s486_s6 = smov [#allocation3]  }
  0x13   :  { %v352_v30 = vld [vmem:[%s642_s5] ss:$0 sm:$0xff]  ;;  %s340_s22 = sshll.u32 %s486_s6, 4  ;;  %s341_s22 = int_to_ptr.vmem [resolvable:$true] %s340_s22 }
  0x14   :  { %408 = vmatpush3.bf16.msra.mxu1 %v448_v8  ;;  %422 = vmatpush3.bf16.msra.mxu0 %v453_v13  ;;  %v361_v39 = vld [vmem:[%s644_s7] ss:$0 sm:$0xff]  ;;  %s460_s5 = scalar_lea.vmem %s341_s22, 64  ;;  %p465_p1 = scmp.lt.s32.totalorder %s341_s22, %s341_s22 }
  0x15   :  { %409 = vmatprep.subr.bf16.mxu1 %v484_v1  ;;  %423 = vmatprep.subr.bf16.mxu0 %v484_v1  ;;  %p461_p0 = scmp.ne.s32.totalorder %s341_s22, %s460_s5  ;;  %p466_p2 = scmp.lt.s32.totalorder %s460_s5, %s460_s5 }
  0x17   :  { %p467_p3 = por %p466_p2, %p465_p1 }
  0x18   :  { %410 = vmatpush3.bf16.msra.mxu1 %v449_v9  ;;  %424 = vmatpush3.bf16.msra.mxu0 %v454_v14 }
  0x19   :  { %411 = vmatprep.subr.bf16.mxu1 %v484_v1  ;;  %425 = vmatprep.subr.bf16.mxu0 %v484_v1  ;;  %p468_p4 = pnand %p467_p3, %p461_p0 }
  0x1c   :  { %412 = vmatpush3.bf16.msra.mxu1 %v450_v10  ;;  %426 = vmatpush3.bf16.msra.mxu0 %v455_v15 }
  0x1d   :  { %413 = vmatprep.subr.bf16.mxu1 %v484_v1  ;;  %427 = vmatprep.subr.bf16.mxu0 %v484_v1 }
  0x20   :  { %414 = vmatpush3.bf16.msra.mxu1 %v451_v11  ;;  %428 = vmatpush3.bf16.msra.mxu0 %v456_v16 }
  0x21   :  { %429 = vmatprep.subr.bf16.mxu0 %v484_v1 }
  0x24   :  { %430 = vmatpush3.bf16.msra.mxu0 %v457_v17 }
  0x25   :  { %431 = vmatprep.subr.bf16.mxu0 %v484_v1 }
  0x28   :  { %432 = vmatpush3.bf16.msra.mxu0 %v458_v28 }
  0x29   :  { %433 = vmatprep.subr.bf16.mxu0 %v484_v1 }
  0x2c   :  { %434 = vmatpush3.bf16.msra.mxu0 %v459_v29 }
  0xdc   :  { %v95_v19 = vpop.f32.mrb[0].mxu0 }
  0xdd   :  { %v96_v21 = vadd.f32 %v348_v18, %v95_v19  ;;  %v397_v22 = vpop.f32.mrb[1].mxu0 }
  0xde   :  { %v98_v23 = vpop.f32.mrb[2].mxu0 }
  0xdf   :  { %vm101_vm2 = vcmp.ge.f32.partialorder %v96_v21, 0.0  ;;  %v103_v24 = vmul.f32 %v102_v20, %v96_v21  ;;  %v398_v25 = vpop.f32.mrb[3].mxu0 }
  0xe1   :  { %v104_v26 = vsel %vm101_vm2, %v96_v21, %v103_v24 }
  0xe2   :  { %v105_v27 = vpack.c.bf16 %v104_v26, %v104_v26 }
  0xe4   :  { %416 = vmatmul.mubr.bf16.vlgmr.msra.gmra.mrb[0].mxu1 %v105_v27 }
 0x1b7   :  { %v211_v31 = vpop.f32.mrb[0].mxu1 }
 0x1b8   :  { %v212_v32 = vadd.f32 %v352_v30, %v211_v31  ;;  %v417_v33 = vpop.f32.mrb[1].mxu1 }
 0x1b9   :  { %v214_v34 = vpop.f32.mrb[2].mxu1 }
 0x1ba   :  { %vm217_vm3 = vcmp.ge.f32.partialorder %v212_v32, 0.0  ;;  %v218_v35 = vmul.f32 %v212_v32, %v102_v20  ;;  %v418_v36 = vpop.f32.mrb[3].mxu1 }
 0x1bc   :  { %v219_v37 = vsel %vm217_vm3, %v212_v32, %v218_v35 }
 0x1bd   :  { %v220_v38 = vpack.c.bf16 %v219_v37, %v219_v37 }
 0x1bf   :  { %436 = vmatmul.mubr.bf16.vlgmr.msra.gmra.mrb[4].mxu0 %v220_v38 }
 0x292   :  { %v326_v40 = vpop.f32.mrb[4].mxu0 }
 0x293   :  { %v327_v41 = vadd.f32 %v361_v39, %v326_v40  ;;  %v437_v42 = vpop.f32.mrb[5].mxu0 }
 0x294   :  { %v329_v43 = vpop.f32.mrb[6].mxu0 }
 0x295   :  { %v438_v44 = vpop.f32.mrb[7].mxu0  ;;  %333 = vst.msk [vmem:[#allocation3] sm:$0xf] %vm332_vm4, %v327_v41 }
 0x296   :  { %471 = shalt.err (!%p468_p4)
}
 0x297   :  { %s472_s7 = scalar_lea.hbm %s645_s8, 64 }
 0x298   :  { %p473_p5 = scmp.ne.s32.totalorder %s645_s8, %s472_s7  ;;  %p476_p6 = scmp.lt.u32.totalorder %s472_s7, %s645_s8 }
 0x29a   :  { %p478_p7 = pnand %p476_p6, %p473_p5 }
 0x29c   :  { %481 = shalt.err (!%p478_p7)
}
 0x29d   :  { %343 = dma.vmem_to_hbm [thread:$0]  %s341_s22, 64, %s645_s8, [#allocation4]  }
 0x29e   :  { %482 = dma.done.wait [#allocation4], 64  }
 0x29f   :  { %483 = vsyncadd [#allocation4], 4294967232 }
 0x2a0   :  { %347 = vsyncpa [#allocation4], 1 }

</bundles_post_ra>
